<compile_context>
chip_gen: v6e
topology: v6e:2x2x1
jax: 0.10.0
libtpu: 0.0.40
codegen_flags: <defaults>
</compile_context>

<pallas_src>
import jax
import jax.numpy as jnp
from jax.experimental import pallas as pl
from jax.experimental.pallas import tpu as pltpu

NEG_SLOPE = 0.01          # torch.nn.LeakyReLU default negative_slope
_LANE = 128               # TPU lane width
_MAX_TB = 32768           # max batch rows per tile (bounded VMEM on all gens)


# --------------------------------------------------------------------------
# Hot kernel: one batch tile per grid step (batch on the lane axis).
#   M^T[v, b] = sum_s w[s] * (idx[s, b] == v)          (VPU, S unrolled)
#   out^T     = LUT^T @ M^T                            (single MXU matmul)
# --------------------------------------------------------------------------
def weighted_lut_kernel(posw_ref, idxT_ref, lutT_ref, outT_ref):
    S, TB = idxT_ref.shape
    V = lutT_ref.shape[1]

    idxT = idxT_ref[...].astype(jnp.int32)                        # (S, TB)
    viota = jax.lax.broadcasted_iota(jnp.int32, (V, TB), 0)       # vocab on sublanes

    m = jnp.zeros((V, TB), jnp.float32)
    for s in range(S):  # S is small & static -> fully unrolled
        # (1, TB) row sublane-broadcasts against the (V, TB) iota; the scalar
        # position weight (SMEM) is folded into the select (no lane shuffles).
        m = m + jnp.where(viota == idxT[s:s + 1, :], posw_ref[s], 0.0)

    outT_ref[...] = jnp.dot(lutT_ref[...], m,
                            preferred_element_type=jnp.float32)   # (Dout, TB)


# --------------------------------------------------------------------------
# Parameter-only prep (tiny; plain jnp so it fuses and adds no kernel launch).
#   LUT[v, :] = tanh(mlp(emb[v]))   ;   posw = softmax(tanh(pos[:S]))
# --------------------------------------------------------------------------
def _prep_tables(params, seq_len):
    h = params["emb"] @ params["w1"] + params["b1"]
    h = jnp.where(h > 0, h, NEG_SLOPE * h)
    h = h @ params["w2"] + params["b2"]
    h = jnp.where(h > 0, h, NEG_SLOPE * h)
    lut = jnp.tanh(h @ params["w3"] + params["b3"])               # (V, Dout)
    posw = jax.nn.softmax(jnp.tanh(params["pos"][:seq_len]))      # (S,)
    return lut.T.astype(jnp.float32), posw.astype(jnp.float32)    # (Dout, V), (S,)


def _round_up(x, m):
    return ((x + m - 1) // m) * m


def _cdiv(a, b):
    return (a + b - 1) // b


def _choose_tiling(B, tb=None):
    """Lane-aligned batch tile size and padded batch."""
    B_lane = _round_up(max(B, 1), _LANE)
    if tb is None:
        n_tiles = _cdiv(B_lane, _MAX_TB)
        # >= 2 tiles when the batch is big enough so the "parallel" grid axis
        # can shard across both TensorCores on v7x.
        if n_tiles == 1 and B_lane >= 4 * _LANE:
            n_tiles = 2
        tb = _round_up(_cdiv(B_lane, n_tiles), _LANE)
    else:
        tb = _round_up(min(tb, B_lane), _LANE)
    B_pad = _round_up(B_lane, tb)
    return tb, B_pad


def model_forward(idx, params, *, tb=None):
    """idx: (B, S) int token ids.  Returns (B, Dout) f32 (matches the module)."""
    B, S = idx.shape
    V = params["emb"].shape[0]          # vocab (= 16)
    Dout = params["w3"].shape[1]        # output_dimension (= 16)

    lutT, posw = _prep_tables(params, S)                # (Dout, V), (S,)

    TB, B_pad = _choose_tiling(B, tb)
    # Pad batch (token id 0 is valid; padded rows sliced off below), cast to
    # int8 (vocab=16 -> 4x less idx HBM read traffic) and transpose so the
    # kernel sees batch on the lane axis.
    idxT = jnp.pad(idx, ((0, B_pad - B), (0, 0))).astype(jnp.int8).T   # (S, B_pad)

    grid = (B_pad // TB,)
    outT = pl.pallas_call(
        weighted_lut_kernel,
        out_shape=jax.ShapeDtypeStruct((Dout, B_pad), jnp.float32),
        grid=grid,
        in_specs=[
            pl.BlockSpec(memory_space=pltpu.MemorySpace.SMEM),   # posw (S,)
            pl.BlockSpec((S, TB), lambda i: (0, i)),             # idx^T tile
            pl.BlockSpec((Dout, V), lambda i: (0, 0)),           # LUT^T (resident)
        ],
        out_specs=pl.BlockSpec((Dout, TB), lambda i: (0, i)),    # lane-dense out^T
        compiler_params=pltpu.CompilerParams(
            dimension_semantics=("parallel",),
        ),
    )(posw, idxT, lutT)

    # Module contract is (B, Dout): transpose the lane-dense slab back.
    return outT[:, :B].T


def ref_forward(idx, params):
    """Pure-JAX reference replicating the PyTorch forward."""
    x = params["emb"][idx]                                    # (B, S, 4)
    h = x @ params["w1"] + params["b1"]
    h = jnp.where(h > 0, h, NEG_SLOPE * h)
    h = h @ params["w2"] + params["b2"]
    h = jnp.where(h > 0, h, NEG_SLOPE * h)
    h = jnp.tanh(h @ params["w3"] + params["b3"])             # (B, S, 16)
    S = idx.shape[1]
    pw = params["pos"][:S][None, :]                           # (1, S)
    w = jax.nn.softmax(jnp.tanh(pw), axis=1)
    return jnp.sum(h * w[..., None], axis=1)                  # (B, 16)


def make_params(key, vocab=16, max_length=100):
    ks = jax.random.split(key, 5)
    ortho = jax.nn.initializers.orthogonal()
    # PyTorch Linear stores weight as (out, in); init at that shape, then
    # transpose so the math is x @ W.
    emb = ortho(ks[0], (vocab, 4), jnp.float32)
    w1 = ortho(ks[1], (5, 4), jnp.float32).T                  # (4, 5)
    w2 = ortho(ks[2], (7, 5), jnp.float32).T                  # (5, 7)
    w3 = ortho(ks[3], (vocab, 7), jnp.float32).T              # (7, 16)
    pos = jax.random.normal(ks[4], (max_length,), jnp.float32)
    return {
        "emb": emb,
        "w1": w1, "b1": jnp.zeros((1, 5), jnp.float32),
        "w2": w2, "b2": jnp.zeros((1, 7), jnp.float32),
        "w3": w3, "b3": jnp.zeros((1, vocab), jnp.float32),
        "pos": pos,
    }


if __name__ == "__main__":
    VOCAB = 16   # output_dimension
    MAXLEN = 100
    B, S = 2, 8

    root = jax.random.PRNGKey(0)
    pkey, k1, k2, k3 = jax.random.split(root, 4)
    params = make_params(pkey, vocab=VOCAB, max_length=MAXLEN)

    # Small-shape check (the module's expected usage).
    x = jax.random.randint(k1, (B, S), 0, VOCAB, dtype=jnp.int32)
    out = model_forward(x, params)
    jax.block_until_ready(out)
    ref = ref_forward(x, params)
    assert out.shape == (B, VOCAB)
    assert jnp.allclose(out, ref, atol=2e-5, rtol=2e-5)

    # Multi-tile grid + batch-padding path (3 tiles of 128 rows).
    x2 = jax.random.randint(k2, (300, S), 0, VOCAB, dtype=jnp.int32)
    out2 = model_forward(x2, params, tb=128)
    jax.block_until_ready(out2)
    assert out2.shape == (300, VOCAB)
    assert jnp.allclose(out2, ref_forward(x2, params), atol=2e-5, rtol=2e-5)

    # Default (auto) tiling: >= 2 tiles so v7x can use both TensorCores.
    x3 = jax.random.randint(k3, (1000, S), 0, VOCAB, dtype=jnp.int32)
    out3 = model_forward(x3, params)
    jax.block_until_ready(out3)
    assert out3.shape == (1000, VOCAB)
    assert jnp.allclose(out3, ref_forward(x3, params), atol=2e-5, rtol=2e-5)

    print("KERNEL_OK")
</pallas_src>

<mosaic_0001>
module attributes {stable_mosaic.version = 11 : i64} {
  func.func @weighted_lut_kernel(%arg0: i32, %arg1: memref<8xf32, #tpu.memory_space<smem>>, %arg2: memref<8x128xi8, #tpu.memory_space<vmem>>, %arg3: memref<16x16xf32, #tpu.memory_space<vmem>>, %arg4: memref<16x128xf32, #tpu.memory_space<vmem>>) attributes {dimension_semantics = [#tpu.dimension_semantics<parallel>], iteration_bounds = array<i64: 1>, scalar_prefetch = 0 : i64, scratch_operands = 0 : i64, tpu.core_type = #tpu.core_type<tc>, window_params = [{transform_indices = @transform_0, window_bounds = array<i64: 8>}, {transform_indices = @transform_1, window_bounds = array<i64: 8, 128>}, {pipeline_mode = #tpu.pipeline_mode<synchronous>, transform_indices = @transform_2, window_bounds = array<i64: 16, 16>}, {transform_indices = @transform_3, window_bounds = array<i64: 16, 128>}]} {
    %c0 = arith.constant 0 : index
    %c0_0 = arith.constant 0 : index
    %0 = vector.load %arg2[%c0, %c0_0] : memref<8x128xi8, #tpu.memory_space<vmem>>, vector<8x128xi8>
    %1 = arith.extsi %0 : vector<8x128xi8> to vector<8x128xi32>
    %2 = tpu.iota {dimensions = array<i32: 0>} : vector<16x128xi32>
    %cst = arith.constant 0.000000e+00 : f32
    %3 = vector.broadcast %cst : f32 to vector<16x128xf32>
    %4 = vector.extract_strided_slice %1 {offsets = [0, 0], sizes = [1, 128], strides = [1, 1]} : vector<8x128xi32> to vector<1x128xi32>
    %5 = vector.broadcast %4 : vector<1x128xi32> to vector<16x128xi32>
    %6 = arith.cmpi eq, %2, %5 : vector<16x128xi32>
    %c0_1 = arith.constant 0 : index
    %7 = memref.load %arg1[%c0_1] : memref<8xf32, #tpu.memory_space<smem>>
    %cst_2 = arith.constant 0.000000e+00 : f32
    %8 = vector.broadcast %7 : f32 to vector<16x128xf32>
    %9 = vector.broadcast %cst_2 : f32 to vector<16x128xf32>
    %10 = arith.select %6, %8, %9 : vector<16x128xi1>, vector<16x128xf32>
    %11 = arith.addf %3, %10 : vector<16x128xf32>
    %12 = vector.extract_strided_slice %1 {offsets = [1, 0], sizes = [1, 128], strides = [1, 1]} : vector<8x128xi32> to vector<1x128xi32>
    %13 = vector.broadcast %12 : vector<1x128xi32> to vector<16x128xi32>
    %14 = arith.cmpi eq, %2, %13 : vector<16x128xi32>
    %c1 = arith.constant 1 : index
    %15 = memref.load %arg1[%c1] : memref<8xf32, #tpu.memory_space<smem>>
    %cst_3 = arith.constant 0.000000e+00 : f32
    %16 = vector.broadcast %15 : f32 to vector<16x128xf32>
    %17 = vector.broadcast %cst_3 : f32 to vector<16x128xf32>
    %18 = arith.select %14, %16, %17 : vector<16x128xi1>, vector<16x128xf32>
    %19 = arith.addf %11, %18 : vector<16x128xf32>
    %20 = vector.extract_strided_slice %1 {offsets = [2, 0], sizes = [1, 128], strides = [1, 1]} : vector<8x128xi32> to vector<1x128xi32>
    %21 = vector.broadcast %20 : vector<1x128xi32> to vector<16x128xi32>
    %22 = arith.cmpi eq, %2, %21 : vector<16x128xi32>
    %c2 = arith.constant 2 : index
    %23 = memref.load %arg1[%c2] : memref<8xf32, #tpu.memory_space<smem>>
    %cst_4 = arith.constant 0.000000e+00 : f32
    %24 = vector.broadcast %23 : f32 to vector<16x128xf32>
    %25 = vector.broadcast %cst_4 : f32 to vector<16x128xf32>
    %26 = arith.select %22, %24, %25 : vector<16x128xi1>, vector<16x128xf32>
    %27 = arith.addf %19, %26 : vector<16x128xf32>
    %28 = vector.extract_strided_slice %1 {offsets = [3, 0], sizes = [1, 128], strides = [1, 1]} : vector<8x128xi32> to vector<1x128xi32>
    %29 = vector.broadcast %28 : vector<1x128xi32> to vector<16x128xi32>
    %30 = arith.cmpi eq, %2, %29 : vector<16x128xi32>
    %c3 = arith.constant 3 : index
    %31 = memref.load %arg1[%c3] : memref<8xf32, #tpu.memory_space<smem>>
    %cst_5 = arith.constant 0.000000e+00 : f32
    %32 = vector.broadcast %31 : f32 to vector<16x128xf32>
    %33 = vector.broadcast %cst_5 : f32 to vector<16x128xf32>
    %34 = arith.select %30, %32, %33 : vector<16x128xi1>, vector<16x128xf32>
    %35 = arith.addf %27, %34 : vector<16x128xf32>
    %36 = vector.extract_strided_slice %1 {offsets = [4, 0], sizes = [1, 128], strides = [1, 1]} : vector<8x128xi32> to vector<1x128xi32>
    %37 = vector.broadcast %36 : vector<1x128xi32> to vector<16x128xi32>
    %38 = arith.cmpi eq, %2, %37 : vector<16x128xi32>
    %c4 = arith.constant 4 : index
    %39 = memref.load %arg1[%c4] : memref<8xf32, #tpu.memory_space<smem>>
    %cst_6 = arith.constant 0.000000e+00 : f32
    %40 = vector.broadcast %39 : f32 to vector<16x128xf32>
    %41 = vector.broadcast %cst_6 : f32 to vector<16x128xf32>
    %42 = arith.select %38, %40, %41 : vector<16x128xi1>, vector<16x128xf32>
    %43 = arith.addf %35, %42 : vector<16x128xf32>
    %44 = vector.extract_strided_slice %1 {offsets = [5, 0], sizes = [1, 128], strides = [1, 1]} : vector<8x128xi32> to vector<1x128xi32>
    %45 = vector.broadcast %44 : vector<1x128xi32> to vector<16x128xi32>
    %46 = arith.cmpi eq, %2, %45 : vector<16x128xi32>
    %c5 = arith.constant 5 : index
    %47 = memref.load %arg1[%c5] : memref<8xf32, #tpu.memory_space<smem>>
    %cst_7 = arith.constant 0.000000e+00 : f32
    %48 = vector.broadcast %47 : f32 to vector<16x128xf32>
    %49 = vector.broadcast %cst_7 : f32 to vector<16x128xf32>
    %50 = arith.select %46, %48, %49 : vector<16x128xi1>, vector<16x128xf32>
    %51 = arith.addf %43, %50 : vector<16x128xf32>
    %52 = vector.extract_strided_slice %1 {offsets = [6, 0], sizes = [1, 128], strides = [1, 1]} : vector<8x128xi32> to vector<1x128xi32>
    %53 = vector.broadcast %52 : vector<1x128xi32> to vector<16x128xi32>
    %54 = arith.cmpi eq, %2, %53 : vector<16x128xi32>
    %c6 = arith.constant 6 : index
    %55 = memref.load %arg1[%c6] : memref<8xf32, #tpu.memory_space<smem>>
    %cst_8 = arith.constant 0.000000e+00 : f32
    %56 = vector.broadcast %55 : f32 to vector<16x128xf32>
    %57 = vector.broadcast %cst_8 : f32 to vector<16x128xf32>
    %58 = arith.select %54, %56, %57 : vector<16x128xi1>, vector<16x128xf32>
    %59 = arith.addf %51, %58 : vector<16x128xf32>
    %60 = vector.extract_strided_slice %1 {offsets = [7, 0], sizes = [1, 128], strides = [1, 1]} : vector<8x128xi32> to vector<1x128xi32>
    %61 = vector.broadcast %60 : vector<1x128xi32> to vector<16x128xi32>
    %62 = arith.cmpi eq, %2, %61 : vector<16x128xi32>
    %c7 = arith.constant 7 : index
    %63 = memref.load %arg1[%c7] : memref<8xf32, #tpu.memory_space<smem>>
    %cst_9 = arith.constant 0.000000e+00 : f32
    %64 = vector.broadcast %63 : f32 to vector<16x128xf32>
    %65 = vector.broadcast %cst_9 : f32 to vector<16x128xf32>
    %66 = arith.select %62, %64, %65 : vector<16x128xi1>, vector<16x128xf32>
    %67 = arith.addf %59, %66 : vector<16x128xf32>
    %c0_10 = arith.constant 0 : index
    %c0_11 = arith.constant 0 : index
    %68 = vector.load %arg3[%c0_10, %c0_11] : memref<16x16xf32, #tpu.memory_space<vmem>>, vector<16x16xf32>
    %cst_12 = arith.constant dense<0.000000e+00> : vector<16x128xf32>
    %69 = tpu.matmul %68, %67, %cst_12 {dimension_numbers = #tpu.dot_dimension_numbers<[1], [0], [0], [1], [0, 0, 1, 1], [], []>} : vector<16x16xf32>, vector<16x128xf32>, vector<16x128xf32> -> vector<16x128xf32>
    %c0_13 = arith.constant 0 : index
    %c0_14 = arith.constant 0 : index
    %70 = vector.load %arg4[%c0_13, %c0_14] : memref<16x128xf32, #tpu.memory_space<vmem>>, vector<16x128xf32>
    tpu.vector_store %arg4[%c0_13, %c0_14], %69 {strides = array<i32>} : memref<16x128xf32, #tpu.memory_space<vmem>>, vector<16x128xf32>,
    return
  }
  func.func @transform_0(%arg0: i32) -> i32 {
    %c0_i32 = arith.constant 0 : i32
    %c0_i32_0 = arith.constant 0 : i32
    return %c0_i32 : i32
  }
  func.func @transform_1(%arg0: i32) -> (i32, i32) {
    %c0_i32 = arith.constant 0 : i32
    %c0_i32_0 = arith.constant 0 : i32
    return %c0_i32, %arg0 : i32, i32
  }
  func.func @transform_2(%arg0: i32) -> (i32, i32) {
    %c0_i32 = arith.constant 0 : i32
    %c0_i32_0 = arith.constant 0 : i32
    %c0_i32_1 = arith.constant 0 : i32
    return %c0_i32, %c0_i32_0 : i32, i32
  }
  func.func @transform_3(%arg0: i32) -> (i32, i32) {
    %c0_i32 = arith.constant 0 : i32
    %c0_i32_0 = arith.constant 0 : i32
    return %c0_i32, %arg0 : i32, i32
  }
}

</mosaic_0001>

<bundles_post_ra>
// kernel: tpu_custom_call.1
= control target key start
LH: loop header
LB: loop body
LE: loop exit
PB: predicated region body
PF: predicated region fallthrough
CT: control target
= control target key end

     0   :  { %8 = vsyncpa [#allocation5], 0  ;;  %s461_s0 = inlined_call_operand.hbm [shape: f32[8], index: 0, kind: input, shape index: {}]   ;;  %s462_s1 = inlined_call_operand.hbm [shape: s8[8,128], index: 1, kind: input, shape index: {}]   ;;  %s463_s2 = inlined_call_operand.hbm [shape: f32[16,16], index: 2, kind: input, shape index: {}]   ;;  %s464_s3 = inlined_call_operand.hbm [shape: f32[16,128], index: 3, kind: output, shape index: {}]  }
   0x1   :  { %9 = vsyncpa [#allocation3], 0 }
   0x2   :  { %10 = vsyncpa [#allocation8], 0 }
   0x3   :  { %11 = vsyncpa [#allocation4], 0  ;;  %s360_s12 = smov [#allocation2]   ;;  %s361_s15 = smov [#allocation6]  }
   0x4   :  { %19 = dma.hbm_to_smem %s461_s0, 16, %s360_s12, [#allocation5]  }
   0x5   :  { %s26_s16 = sshll.u32 %s361_s15, 4  ;;  %s362_s17 = smov [#allocation7]   ;;  %s27_s16 = int_to_ptr.vmem [resolvable:$true] %s26_s16 }
   0x6   :  { %s35_s18 = sshll.u32 %s362_s17, 4  ;;  %s300_s19 = scalar_lea.vmem %s27_s16, 32  ;;  %s36_s18 = int_to_ptr.vmem [resolvable:$true] %s35_s18 }
   0x7   :  { %p301_p0 = scmp.ne.s32.totalorder %s27_s16, %s300_s19  ;;  %p305_p1 = scmp.lt.s32.totalorder %s27_s16, %s27_s16 }
   0x8   :  { %p306_p2 = scmp.lt.s32.totalorder %s300_s19, %s300_s19 }
   0xa   :  { %p307_p3 = por %p306_p2, %p305_p1 }
   0xc   :  { %p308_p4 = pnand %p307_p3, %p301_p0 }
   0xe   :  { %311 = shalt.err (!%p308_p4)
}
   0xf   :  { %29 = dma.hbm_to_vmem [thread:$0]  %s462_s1, 32, %s27_s16, [#allocation3]  }
  0x10   :  { %s320_s22 = scalar_lea.vmem %s36_s18, 256  ;;  %p325_p6 = scmp.lt.s32.totalorder %s36_s18, %s36_s18 }
  0x11   :  { %p321_p5 = scmp.ne.s32.totalorder %s36_s18, %s320_s22  ;;  %p326_p7 = scmp.lt.s32.totalorder %s320_s22, %s320_s22 }
  0x13   :  { %p327_p8 = por %p326_p7, %p325_p6 }
  0x15   :  { %p328_p9 = pnand %p327_p8, %p321_p5 }
  0x17   :  { %331 = shalt.err (!%p328_p9)
}
  0x18   :  { %s363_s0 = smov 128   ;;  %s364_s23 = smov 8  }
  0x19   :  { %41 = dma.hbm_to_vmem [thread:$0]  %s463_s2, 256, %s36_s18, [#allocation8], %s363_s0, %s363_s0, %s364_s23  }
  0x1a   :  { %352 = dma.done.wait [#allocation5], 16  }
  0x1b   :  { %353 = vsyncadd [#allocation5], 4294967280 }
  0x1c   :  { %354 = dma.done.wait [#allocation3], 32  }
  0x1d   :  { %355 = vsyncadd [#allocation3], 4294967264 }
  0x1e   :  { %356 = dma.done.wait [#allocation8], 256  }
  0x1f   :  { %357 = vsyncadd [#allocation8], 4294967040 }
  0x20   :  { %51 = sfence }
  0x21   :  { %v52_v0 = vld [vmem:[#allocation6] sm:$0x3]  ;;  %v54_v1 = vlaneseq  ;;  %s398_s1 = sld [smem:[#allocation2]]  ;;  %v153_v2 = vld [vmem:[#allocation7] sm:$0xff]  ;;  %vm155_vm0 = vcmask 130048   ;;  %v154_v60 = vld [vmem:[#allocation7 + $0x8] sm:$0xff] }
  0x22   :  { %s400_s26 = sld [smem:[#allocation2 + $0x1]]  ;;  %275 = vmatprep.mubr.msk.f32.mxu0 %vm155_vm0, %v153_v2  ;;  %v53_v3 = vunpack.c.0.s8 %v52_v0  ;;  %s365_s5 = smov [#allocation9]  }
  0x23   :  { %v403_v4 = vshrl.u32 %v54_v1, 7  ;;  %s405_s2 = sld [smem:[#allocation2 + $0x2]]  ;;  %s244_s6 = sshll.u32 %s365_s5, 4  ;;  %s245_s6 = int_to_ptr.vmem [resolvable:$true] %s244_s6 }
  0x24   :  { %s413_s27 = sld [smem:[#allocation2 + $0x3]]  ;;  %s332_s7 = scalar_lea.vmem %s245_s6, 256 }
  0x25   :  { %v408_v5 = vadd.s32 8, %v403_v4  ;;  %v59_v6 = vsub.s32 0, %v403_v4  ;;  %v71_v7 = vsub.s32 1, %v403_v4  ;;  %v83_v8 = vsub.s32 2, %v403_v4  ;;  %s417_s28 = sld [smem:[#allocation2 + $0x4]]  ;;  %p333_p10 = scmp.ne.s32.totalorder %s245_s6, %s332_s7 }
  0x26   :  { %v95_v9 = vsub.s32 3, %v403_v4  ;;  %v107_v10 = vsub.s32 4, %v403_v4  ;;  %v119_v11 = vsub.s32 5, %v403_v4  ;;  %s421_s29 = sld [smem:[#allocation2 + $0x5]]  ;;  %v131_v25 = vsub.s32 6, %v403_v4  ;;  %p337_p11 = scmp.lt.s32.totalorder %s245_s6, %s245_s6 }
  0x27   :  { %v60_v12 = vrot.slane %v53_v3, %v59_v6  ;;  %v64_v13 = vstv %s398_s1  ;;  %v72_v14 = vrot.slane %v53_v3, %v71_v7  ;;  %v84_v15 = vrot.slane %v53_v3, %v83_v8  ;;  %s424_s30 = sld [smem:[#allocation2 + $0x6]]  ;;  %p338_p12 = scmp.lt.s32.totalorder %s332_s7, %s332_s7 }
  0x28   :  { %v76_v16 = vstv %s400_s26  ;;  %v96_v17 = vrot.slane %v53_v3, %v95_v9  ;;  %v108_v18 = vrot.slane %v53_v3, %v107_v10  ;;  %v120_v21 = vrot.slane %v53_v3, %v119_v11  ;;  %s429_s4 = sld [smem:[#allocation2 + $0x7]] }
  0x29   :  { %vm62_vm1 = vcmp.eq.s32.totalorder %v408_v5, %v60_v12  ;;  %vm74_vm2 = vcmp.eq.s32.totalorder %v408_v5, %v72_v14  ;;  %vm61_vm3 = vcmp.eq.s32.totalorder %v403_v4, %v60_v12  ;;  %vm73_vm4 = vcmp.eq.s32.totalorder %v403_v4, %v72_v14  ;;  %p339_p13 = por %p338_p12, %p337_p11 }
  0x2a   :  { %v66_v19 = vsel %vm62_vm1, %v64_v13, 0.0  ;;  %v78_v20 = vsel %vm74_vm2, %v76_v16, 0.0  ;;  %vm86_vm5 = vcmp.eq.s32.totalorder %v408_v5, %v84_v15  ;;  %v88_v23 = vstv %s405_s2 }
  0x2b   :  { %v80_v22 = vadd.f32 %v78_v20, %v66_v19  ;;  %v90_v24 = vsel %vm86_vm5, %v88_v23, 0.0  ;;  %vm98_vm6 = vcmp.eq.s32.totalorder %v408_v5, %v96_v17  ;;  %v65_v26 = vsel %vm61_vm3, %v64_v13, 0.0  ;;  %p340_p0 = pnand %p339_p13, %p333_p10 }
  0x2c   :  { %v100_v28 = vstv %s413_s27  ;;  %vm110_vm7 = vcmp.eq.s32.totalorder %v408_v5, %v108_v18  ;;  %v77_v29 = vsel %vm73_vm4, %v76_v16, 0.0  ;;  %vm85_vm8 = vcmp.eq.s32.totalorder %v403_v4, %v84_v15 }
  0x2d   :  { %v92_v27 = vadd.f32 %v90_v24, %v80_v22  ;;  %v102_v30 = vsel %vm98_vm6, %v100_v28, 0.0  ;;  %v112_v31 = vstv %s417_s28  ;;  %vm97_vm9 = vcmp.eq.s32.totalorder %v403_v4, %v96_v17 }
  0x2e   :  { %v114_v33 = vsel %vm110_vm7, %v112_v31, 0.0  ;;  %vm122_vm10 = vcmp.eq.s32.totalorder %v408_v5, %v120_v21  ;;  %v124_v34 = vstv %s421_s29  ;;  %v132_v35 = vrot.slane %v53_v3, %v131_v25 }
  0x2f   :  { %v104_v32 = vadd.f32 %v102_v30, %v92_v27  ;;  %v136_v36 = vstv %s424_s30  ;;  %v143_v37 = vsub.s32 7, %v403_v4  ;;  %v89_v38 = vsel %vm85_vm8, %v88_v23, 0.0 }
  0x30   :  { %vm109_vm11 = vcmp.eq.s32.totalorder %v403_v4, %v108_v18  ;;  %v126_v40 = vsel %vm122_vm10, %v124_v34, 0.0  ;;  %vm134_vm12 = vcmp.eq.s32.totalorder %v408_v5, %v132_v35  ;;  %v148_v42 = vstv %s429_s4 }
  0x31   :  { %v116_v39 = vadd.f32 %v114_v33, %v104_v32  ;;  %v144_v41 = vrot.slane %v53_v3, %v143_v37  ;;  %v79_v43 = vadd.f32 %v77_v29, %v65_v26  ;;  %v101_v44 = vsel %vm97_vm9, %v100_v28, 0.0 }
  0x32   :  { %v138_v46 = vsel %vm134_vm12, %v136_v36, 0.0  ;;  %vm121_vm13 = vcmp.eq.s32.totalorder %v403_v4, %v120_v21  ;;  %v113_v48 = vsel %vm109_vm11, %v112_v31, 0.0  ;;  %vm133_vm15 = vcmp.eq.s32.totalorder %v403_v4, %v132_v35 }
  0x33   :  { %v128_v45 = vadd.f32 %v126_v40, %v116_v39  ;;  %vm146_vm14 = vcmp.eq.s32.totalorder %v408_v5, %v144_v41  ;;  %v91_v47 = vadd.f32 %v89_v38, %v79_v43  ;;  %v125_v52 = vsel %vm121_vm13, %v124_v34, 0.0 }
  0x34   :  { %v150_v50 = vsel %vm146_vm14, %v148_v42, 0.0  ;;  %vm145_vm1 = vcmp.eq.s32.totalorder %v403_v4, %v144_v41  ;;  %v137_v55 = vsel %vm133_vm15, %v136_v36, 0.0 }
  0x35   :  { %v140_v49 = vadd.f32 %v138_v46, %v128_v45  ;;  %v103_v51 = vadd.f32 %v101_v44, %v91_v47  ;;  %v149_v57 = vsel %vm145_vm1, %v148_v42, 0.0 }
  0x37   :  { %v152_v53 = vadd.f32 %v150_v50, %v140_v49  ;;  %v115_v54 = vadd.f32 %v113_v48, %v103_v51 }
  0x39   :  { %271 = vmatprep.subr.mxu0 %v152_v53  ;;  %v127_v56 = vadd.f32 %v125_v52, %v115_v54 }
  0x3a   :  { %272 = vmatpush3.msra.mxu0 %v152_v53 }
  0x3b   :  { %v139_v58 = vadd.f32 %v137_v55, %v127_v56 }
  0x3d   :  { %v151_v59 = vadd.f32 %v149_v57, %v139_v58 }
  0x3f   :  { %273 = vmatprep.subr.mxu0 %v151_v59 }
  0x40   :  { %274 = vmatpush3.msra.mxu0 %v151_v59 }
  0x41   :  { %276 = vmatmul.mubr.msk.f32.vlgmr.msra.gmra.mxu0 %vm155_vm0, %v154_v60 }
 0x101   :  { %v277_v61 = vpop.f32.mrf.mxu0 }
 0x102   :  { %238 = vst [vmem:[#allocation9 + $0x8] sm:$0xff] %v277_v61 }
 0x103   :  { %v228_v62 = vpop.f32.mrf.mxu0 }
 0x104   :  { %237 = vst [vmem:[#allocation9] sm:$0xff] %v228_v62 }
 0x105   :  { %343 = shalt.err (!%p340_p0)
}
 0x106   :  { %250 = dma.vmem_to_hbm [thread:$0]  %s245_s6, 256, %s464_s3, [#allocation4], %s363_s0, %s363_s0, %s364_s23  }
 0x107   :  { %358 = dma.done.wait [#allocation4], 256  }
 0x108   :  { %359 = vsyncadd [#allocation4], 4294967040 }
 0x109   :  { %254 = vsyncpa [#allocation3], 1 }
 0x10a   :  { %255 = vsyncpa [#allocation8], 1 }
 0x10b   :  { %256 = vsyncpa [#allocation4], 1 }
 0x10c   :  { %257 = vsyncpa [#allocation5], 1 }

</bundles_post_ra>
